<compile_context>
chip_gen: v6e
topology: v6e:2x2x1
jax: 0.10.0
libtpu: 0.0.40
codegen_flags: <defaults>
</compile_context>

<pallas_src>
import math

import jax
import jax.numpy as jnp
from jax import lax
from jax.experimental import pallas as pl
from jax.experimental.pallas import tpu as pltpu


# -----------------------------------------------------------------------------
# Kernel 1: per-head QKV projection (bf16 MXU operands, f32 accumulation).
# -----------------------------------------------------------------------------
def _qkv_kernel_split(x_ref, wq_ref, wk_ref, wv_ref, q_ref, k_ref, v_ref):
    """x: (1,tq,d_in); w*: (1,d_in,d_h); q/k/v: (1,1,tq,d_h)."""
    x = x_ref[0]
    q_ref[0, 0] = jnp.dot(x, wq_ref[0],
                          preferred_element_type=jnp.float32).astype(q_ref.dtype)
    k_ref[0, 0] = jnp.dot(x, wk_ref[0],
                          preferred_element_type=jnp.float32).astype(k_ref.dtype)
    v_ref[0, 0] = jnp.dot(x, wv_ref[0],
                          preferred_element_type=jnp.float32).astype(v_ref.dtype)


def _make_qkv_kernel_fused(d_h):
    """One (tq,d_in)@(d_in,3*d_h) matmul per head. Only used when d_h % 128 == 0
    so the q/k/v output slices are lane-aligned (zero-risk static slices)."""
    def kernel(x_ref, w_ref, q_ref, k_ref, v_ref):
        qkv = jnp.dot(x_ref[0], w_ref[0], preferred_element_type=jnp.float32)
        q_ref[0, 0] = qkv[:, 0 * d_h:1 * d_h].astype(q_ref.dtype)
        k_ref[0, 0] = qkv[:, 1 * d_h:2 * d_h].astype(k_ref.dtype)
        v_ref[0, 0] = qkv[:, 2 * d_h:3 * d_h].astype(v_ref.dtype)
    return kernel


# -----------------------------------------------------------------------------
# Kernel 2: causal attention (block-skipped, exact A) + output projection.
# -----------------------------------------------------------------------------
def _make_attn_kernel(tq, tkv, nkv, compute_dtype):
    def kernel(q_ref, k_ref, v_ref, wo_ref, bo_ref, z_ref, a_ref,
               acc_ref, ctx_ref, m_ref, l_ref):
        """
        q_ref : (1, 1, tq, d_h) bf16   (1/sqrt(d_h) folded into Wq)
        k_ref : (1, 1, T,  d_h) bf16
        v_ref : (1, 1, T,  d_h) bf16
        wo_ref: (h, d_h, d_out) bf16   resident (constant index map)
        bo_ref: (1, d_out) f32
        z_ref : (1, tq, d_out)         written on the last head
        a_ref : (1, 1, tq, T) f32      exact post-softmax attention
        acc_ref: VMEM (tq, d_out) f32  Z accumulator across heads
        ctx_ref: VMEM (tq, d_h)  f32   per-head context accumulator
        m_ref, l_ref: VMEM (tq, 1) f32 row max / softmax denominator
        """
        qi = pl.program_id(1)
        hi = pl.program_id(2)
        nh = pl.num_programs(2)

        @pl.when(hi == 0)
        def _init_z():
            acc_ref[...] = jnp.zeros_like(acc_ref)

        m_ref[...] = jnp.full_like(m_ref, -jnp.inf)
        l_ref[...] = jnp.zeros_like(l_ref)
        ctx_ref[...] = jnp.zeros_like(ctx_ref)

        q = q_ref[0, 0]                                   # (tq, d_h) bf16
        kv_limit = (qi + 1) * tq                          # first fully-masked column
        row_g = lax.broadcasted_iota(jnp.int32, (tq, tkv), 0) + qi * tq
        col_l = lax.broadcasted_iota(jnp.int32, (tq, tkv), 1)

        # ---- Pass 1: raw scores for causally-active KV tiles (parked in the
        #      A block) + running row max.  Fully-masked tiles are skipped.
        for j in range(nkv):
            active = (j * tkv) < kv_limit

            @pl.when(active)
            def _scores(j=j):
                kj = k_ref[0, 0, j * tkv:(j + 1) * tkv, :]        # (tkv, d_h)
                s = lax.dot_general(q, kj, (((1,), (1,)), ((), ())),
                                    preferred_element_type=jnp.float32)
                s = jnp.where(row_g >= col_l + j * tkv, s, -jnp.inf)
                m_ref[...] = jnp.maximum(m_ref[...],
                                         jnp.max(s, axis=-1, keepdims=True))
                a_ref[0, 0, :, j * tkv:(j + 1) * tkv] = s

        # ---- Pass 2: e = exp(s - m); accumulate denominator and unnormalized
        #      context; e parked back into the A block (exp runs exactly once).
        for j in range(nkv):
            active = (j * tkv) < kv_limit

            @pl.when(active)
            def _exp_av(j=j):
                s = a_ref[0, 0, :, j * tkv:(j + 1) * tkv]
                e = jnp.exp(s - m_ref[...])
                l_ref[...] += jnp.sum(e, axis=-1, keepdims=True)
                vj = v_ref[0, 0, j * tkv:(j + 1) * tkv, :]
                ctx_ref[...] += jnp.dot(e.astype(compute_dtype), vj,
                                        preferred_element_type=jnp.float32)
                a_ref[0, 0, :, j * tkv:(j + 1) * tkv] = e

        inv_l = 1.0 / l_ref[...]                          # exact; (tq, 1) only

        # ---- Pass 3: normalize active A tiles; zero the skipped ones.
        for j in range(nkv):
            active = (j * tkv) < kv_limit

            @pl.when(active)
            def _norm(j=j):
                a_ref[0, 0, :, j * tkv:(j + 1) * tkv] = (
                    a_ref[0, 0, :, j * tkv:(j + 1) * tkv] * inv_l)

            @pl.when(jnp.logical_not(active))
            def _zero(j=j):
                a_ref[0, 0, :, j * tkv:(j + 1) * tkv] = jnp.zeros(
                    (tq, tkv), dtype=a_ref.dtype)

        # Per-head contribution to the output projection, accumulated in f32:
        #   Z += ((e @ V) / l) @ Wo[h]
        ctx = ctx_ref[...] * inv_l
        acc_ref[...] += jnp.dot(ctx.astype(compute_dtype), wo_ref[hi],
                                preferred_element_type=jnp.float32)

        @pl.when(hi == nh - 1)
        def _finalize():
            z_ref[0] = (acc_ref[...] + bo_ref[...]).astype(z_ref.dtype)

    return kernel


# -----------------------------------------------------------------------------
# Wrapper.
# -----------------------------------------------------------------------------
def _vmem_budget_bytes():
    """Effective per-core VMEM budget: 75% of physical, capped at 100 MiB.
    (v5e/v6e -> ~96 MiB, v7x -> 48 MiB; conservative 48 MiB fallback.)"""
    try:
        phys = int(pltpu.get_tpu_info().vmem_capacity_bytes)
    except Exception:
        phys = 64 * 1024 * 1024
    return min(int(phys * 0.75), 100 * 1024 * 1024)


def _kernel2_working_set(tq, T, d_h, d_out, cbytes):
    ws = 2 * (2 * T * d_h * cbytes)          # K, V blocks (tq-independent), x2 buffers
    ws += 2 * (tq * d_h * cbytes)            # Q block
    ws += 2 * (tq * T * 4)                   # A output block (f32)
    ws += 2 * (tq * d_out * 4)               # Z output block
    ws += 2 * (d_out * d_out * cbytes)       # resident Wo
    ws += tq * d_out * 4 + tq * d_h * 4 + 2 * tq * 4   # scratch
    ws += 2 * d_out * 4                      # bias
    return ws


def _pick_q_tile(T, d_h, d_out, cbytes, budget):
    """Largest query tile (preferring multiples of 128, up to 512) dividing T
    whose kernel-2 working set fits the effective VMEM budget."""
    if T <= 128:
        return T
    cands = [c for c in (512, 256, 128) if T % c == 0]
    cands += [c for c in range(min(T, 512), 7, -8)
              if T % c == 0 and c not in cands]
    if not cands:
        # TODO(synk): pad T to a multiple of 8 instead of taking the whole row.
        return T
    for tq in cands:
        if _kernel2_working_set(tq, T, d_h, d_out, cbytes) <= budget:
            return tq
    return cands[-1]


def multihead_causal_self_attention(x, wq, wk, wv, wo, bo, *, num_heads,
                                    q_tile=None, compute_dtype=jnp.bfloat16):
    """Forward pass of MultiHeadCausalSelfAttention (eval mode).

    x: (b, T, d_in) f32. Weights in PyTorch nn.Linear layout (out, in).
    Returns (Z, A) with Z: (b, T, d_out) f32, A: (b, h, T, T) f32.
    """
    b, T, d_in = x.shape
    d_out = wq.shape[0]
    h = num_heads
    assert d_out % h == 0, "out_embedding_dim must be divisible by num_heads!"
    d_h = d_out // h

    cbytes = jnp.dtype(compute_dtype).itemsize
    budget = _vmem_budget_bytes()
    tq = q_tile if q_tile is not None else _pick_q_tile(T, d_h, d_out, cbytes, budget)
    assert T % tq == 0, "query tile must divide T"
    nq = T // tq
    # Causal-skip granularity: lane-aligned 128 when possible, else one tile.
    tkv = 128 if T % 128 == 0 else T
    nkv = T // tkv

    # One-time layout plumbing (wrapper, not per grid step): head-major
    # pre-transposed projection weights (h, d_in, d_h) with 1/sqrt(d_h) folded
    # into Wq, Wo^T reshaped to (h, d_h, d_out); all matmul operands in bf16.
    scale = jnp.float32(1.0 / float(d_h) ** 0.5)

    def head_major(w, s=None):
        wh = w.reshape(h, d_h, d_in)
        if s is not None:
            wh = wh * s
        return jnp.transpose(wh, (0, 2, 1))          # (h, d_in, d_h) f32

    wq_r = head_major(wq, scale)
    wk_r = head_major(wk)
    wv_r = head_major(wv)
    wo_r = jnp.transpose(wo, (1, 0)).reshape(h, d_h, d_out).astype(compute_dtype)
    bo2 = bo.reshape(1, d_out).astype(jnp.float32)
    x_c = x.astype(compute_dtype)

    # -------------------- Kernel 1: QKV -> (b, h, T, d_h) --------------------
    qkv_out = tuple(jax.ShapeDtypeStruct((b, h, T, d_h), compute_dtype)
                    for _ in range(3))
    qkv_out_specs = [
        pl.BlockSpec((1, 1, tq, d_h), lambda bi, qi, hi: (bi, hi, qi, 0))
        for _ in range(3)
    ]

    if d_h % 128 == 0:
        wqkv_r = jnp.concatenate([wq_r, wk_r, wv_r], axis=-1).astype(compute_dtype)
        kernel1 = _make_qkv_kernel_fused(d_h)
        k1_inputs = (x_c, wqkv_r)
        k1_in_specs = [
            pl.BlockSpec((1, tq, d_in), lambda bi, qi, hi: (bi, qi, 0)),
            pl.BlockSpec((1, d_in, 3 * d_h), lambda bi, qi, hi: (hi, 0, 0)),
        ]
    else:
        kernel1 = _qkv_kernel_split
        k1_inputs = (x_c, wq_r.astype(compute_dtype),
                     wk_r.astype(compute_dtype), wv_r.astype(compute_dtype))
        k1_in_specs = [
            pl.BlockSpec((1, tq, d_in), lambda bi, qi, hi: (bi, qi, 0)),
            pl.BlockSpec((1, d_in, d_h), lambda bi, qi, hi: (hi, 0, 0)),
            pl.BlockSpec((1, d_in, d_h), lambda bi, qi, hi: (hi, 0, 0)),
            pl.BlockSpec((1, d_in, d_h), lambda bi, qi, hi: (hi, 0, 0)),
        ]

    q, k, v = pl.pallas_call(
        kernel1,
        out_shape=qkv_out,
        grid_spec=pltpu.PrefetchScalarGridSpec(
            num_scalar_prefetch=0,
            grid=(b, nq, h),
            in_specs=k1_in_specs,
            out_specs=qkv_out_specs,
        ),
        compiler_params=pltpu.CompilerParams(
            dimension_semantics=("parallel", "parallel", "arbitrary"),
            vmem_limit_bytes=budget),
    )(*k1_inputs)

    # ------------ Kernel 2: causal attention + output projection -------------
    attn_kernel = _make_attn_kernel(tq, tkv, nkv, compute_dtype)
    z, a = pl.pallas_call(
        attn_kernel,
        out_shape=(jax.ShapeDtypeStruct((b, T, d_out), x.dtype),
                   jax.ShapeDtypeStruct((b, h, T, T), jnp.float32)),
        grid_spec=pltpu.PrefetchScalarGridSpec(
            num_scalar_prefetch=0,
            grid=(b, nq, h),             # head axis last = Z accumulation axis
            in_specs=[
                pl.BlockSpec((1, 1, tq, d_h), lambda bi, qi, hi: (bi, hi, qi, 0)),
                pl.BlockSpec((1, 1, T, d_h), lambda bi, qi, hi: (bi, hi, 0, 0)),
                pl.BlockSpec((1, 1, T, d_h), lambda bi, qi, hi: (bi, hi, 0, 0)),
                pl.BlockSpec((h, d_h, d_out), lambda bi, qi, hi: (0, 0, 0)),
                pl.BlockSpec((1, d_out), lambda bi, qi, hi: (0, 0)),
            ],
            out_specs=[
                pl.BlockSpec((1, tq, d_out), lambda bi, qi, hi: (bi, qi, 0)),
                pl.BlockSpec((1, 1, tq, T), lambda bi, qi, hi: (bi, hi, qi, 0)),
            ],
            scratch_shapes=[
                pltpu.VMEM((tq, d_out), jnp.float32),
                pltpu.VMEM((tq, d_h), jnp.float32),
                pltpu.VMEM((tq, 1), jnp.float32),
                pltpu.VMEM((tq, 1), jnp.float32),
            ],
        ),
        compiler_params=pltpu.CompilerParams(
            dimension_semantics=("parallel", "parallel", "arbitrary"),
            vmem_limit_bytes=budget),
    )(q, k, v, wo_r, bo2)
    return z, a


# -----------------------------------------------------------------------------
# References (pure JAX).
# -----------------------------------------------------------------------------
def _reference_f32(x, wq, wk, wv, wo, bo, *, num_heads):
    """Exact f32 mirror of the PyTorch forward (eval mode)."""
    hp = jax.lax.Precision.HIGHEST
    b, T, d_in = x.shape
    d_out = wq.shape[0]
    d_h = d_out // num_heads

    def proj(w):
        y = jnp.einsum("btd,od->bto", x, w, precision=hp)
        return y.reshape(b, T, num_heads, d_h).transpose(0, 2, 1, 3)

    q, k, v = proj(wq), proj(wk), proj(wv)
    s = jnp.einsum("bhqd,bhkd->bhqk", q, k, precision=hp) / jnp.sqrt(jnp.float32(d_h))
    mask = jnp.triu(jnp.full((T, T), -jnp.inf, jnp.float32), k=1)
    s = jnp.tril(s) + mask
    a = jax.nn.softmax(s, axis=-1)
    z = jnp.einsum("bhqk,bhkd->bhqd", a, v, precision=hp)
    z = z.transpose(0, 2, 1, 3).reshape(b, T, d_out)
    z = jnp.einsum("bto,po->btp", z, wo, precision=hp) + bo
    return z, a


def _reference_matched(x, wq, wk, wv, wo, bo, *, num_heads,
                       compute_dtype=jnp.bfloat16):
    """Mirrors the kernel's bf16-operand / f32-accumulation numerics."""
    b, T, d_in = x.shape
    d_out = wq.shape[0]
    h = num_heads
    d_h = d_out // h
    scale = jnp.float32(1.0 / float(d_h) ** 0.5)
    xc = x.astype(compute_dtype)

    def proj(w, s=None):
        wh = w.reshape(h, d_h, d_in)
        if s is not None:
            wh = wh * s
        wh = jnp.transpose(wh, (0, 2, 1)).astype(compute_dtype)   # (h, d_in, d_h)
        y = jnp.einsum("btd,hdk->bhtk", xc, wh,
                       preferred_element_type=jnp.float32)
        return y.astype(compute_dtype)

    q = proj(wq, scale)
    k = proj(wk)
    v = proj(wv)
    s = jnp.einsum("bhqd,bhkd->bhqk", q, k, preferred_element_type=jnp.float32)
    row = lax.broadcasted_iota(jnp.int32, (T, T), 0)
    col = lax.broadcasted_iota(jnp.int32, (T, T), 1)
    s = jnp.where(row >= col, s, -jnp.inf)
    m = jnp.max(s, axis=-1, keepdims=True)
    e = jnp.exp(s - m)
    inv_l = 1.0 / jnp.sum(e, axis=-1, keepdims=True)
    a = e * inv_l
    ctx = jnp.einsum("bhqk,bhkd->bhqd", e.astype(compute_dtype), v,
                     preferred_element_type=jnp.float32) * inv_l
    ctx = ctx.transpose(0, 2, 1, 3).reshape(b, T, d_out)
    z = jnp.einsum("bto,op->btp", ctx.astype(compute_dtype),
                   wo.T.astype(compute_dtype),
                   preferred_element_type=jnp.float32) + bo
    return z, a


def _run_case(key, *, b, T, d_in, d_out, h, q_tile=None, label=""):
    kx, kq, kk, kv, ko, kb = jax.random.split(key, 6)
    x = jax.random.normal(kx, (b, T, d_in), dtype=jnp.float32)
    wq = jax.random.normal(kq, (d_out, d_in), dtype=jnp.float32) * 0.1
    wk = jax.random.normal(kk, (d_out, d_in), dtype=jnp.float32) * 0.1
    wv = jax.random.normal(kv, (d_out, d_in), dtype=jnp.float32) * 0.1
    wo = jax.random.normal(ko, (d_out, d_out), dtype=jnp.float32) * 0.1
    bo = jax.random.normal(kb, (d_out,), dtype=jnp.float32) * 0.1

    z, a = multihead_causal_self_attention(x, wq, wk, wv, wo, bo,
                                           num_heads=h, q_tile=q_tile)
    jax.block_until_ready((z, a))
    assert z.shape == (b, T, d_out) and a.shape == (b, h, T, T)

    # Structural checks (independent of bf16 rounding): strictly-upper-
    # triangular A is exactly zero (causal mask / tile skipping), rows sum to 1.
    upper = jnp.triu(jnp.ones((T, T), dtype=bool), k=1)
    assert float(jnp.max(jnp.abs(jnp.where(upper, a, 0.0)))) == 0.0, \
        f"{label}: causal leak in A"
    assert jnp.allclose(jnp.sum(a, axis=-1), 1.0, atol=1e-3), \
        f"{label}: softmax rows do not sum to 1"

    # Tight check against a reference mirroring the kernel's bf16/f32 numerics.
    z_m, a_m = _reference_matched(x, wq, wk, wv, wo, bo, num_heads=h)
    assert jnp.allclose(a, a_m, atol=1e-2, rtol=1e-2), f"{label}: A vs matched ref"
    assert jnp.allclose(z, z_m, atol=1e-2, rtol=1e-2), f"{label}: Z vs matched ref"

    # Loose check against exact f32 module semantics (bf16 MXU rounding only).
    z_f, a_f = _reference_f32(x, wq, wk, wv, wo, bo, num_heads=h)
    assert jnp.allclose(a, a_f, atol=8e-2, rtol=8e-2), f"{label}: A vs f32 ref"
    assert jnp.allclose(z, z_f, atol=8e-2, rtol=8e-2), f"{label}: Z vs f32 ref"


if __name__ == "__main__":
    key = jax.random.PRNGKey(0)
    k1, k2, k3 = jax.random.split(key, 3)
    # Small shape consistent with the module (single q / KV tile).
    _run_case(k1, b=2, T=8, d_in=32, d_out=32, h=4, label="small")
    # Larger shape exercising query tiling, block-level causal KV skipping and
    # cross-head Z accumulation (d_h < 128 -> split-QKV kernel-1 path).
    _run_case(k2, b=2, T=512, d_in=128, d_out=128, h=4, q_tile=128, label="large")
    # d_h == 128 exercises the fused-QKV kernel-1 path with lane-aligned slices.
    _run_case(k3, b=1, T=256, d_in=64, d_out=256, h=2, q_tile=128, label="fused")
    print("KERNEL_OK")
</pallas_src>

<mosaic_0001>
module attributes {stable_mosaic.version = 11 : i64} {
  func.func @_qkv_kernel_split(%arg0: i32, %arg1: i32, %arg2: i32, %arg3: memref<1x8x32xbf16, #tpu.memory_space<vmem>>, %arg4: memref<1x32x8xbf16, #tpu.memory_space<vmem>>, %arg5: memref<1x32x8xbf16, #tpu.memory_space<vmem>>, %arg6: memref<1x32x8xbf16, #tpu.memory_space<vmem>>, %arg7: memref<1x1x8x8xbf16, #tpu.memory_space<vmem>>, %arg8: memref<1x1x8x8xbf16, #tpu.memory_space<vmem>>, %arg9: memref<1x1x8x8xbf16, #tpu.memory_space<vmem>>) attributes {dimension_semantics = [#tpu.dimension_semantics<parallel>, #tpu.dimension_semantics<parallel>, #tpu.dimension_semantics<arbitrary>], iteration_bounds = array<i64: 2, 1, 4>, scalar_prefetch = 0 : i64, scratch_operands = 0 : i64, tpu.core_type = #tpu.core_type<tc>, window_params = [{transform_indices = @transform_0, window_bounds = array<i64: 1, 8, 32>}, {transform_indices = @transform_1, window_bounds = array<i64: 1, 32, 8>}, {transform_indices = @transform_2, window_bounds = array<i64: 1, 32, 8>}, {transform_indices = @transform_3, window_bounds = array<i64: 1, 32, 8>}, {transform_indices = @transform_4, window_bounds = array<i64: 1, 1, 8, 8>}, {transform_indices = @transform_5, window_bounds = array<i64: 1, 1, 8, 8>}, {transform_indices = @transform_6, window_bounds = array<i64: 1, 1, 8, 8>}]} {
    %c0 = arith.constant 0 : index
    %c0_0 = arith.constant 0 : index
    %c0_1 = arith.constant 0 : index
    %0 = vector.load %arg3[%c0, %c0_0, %c0_1] : memref<1x8x32xbf16, #tpu.memory_space<vmem>>, vector<1x8x32xbf16>
    %1 = vector.shape_cast %0 : vector<1x8x32xbf16> to vector<8x32xbf16>
    %c0_2 = arith.constant 0 : index
    %c0_3 = arith.constant 0 : index
    %c0_4 = arith.constant 0 : index
    %2 = vector.load %arg4[%c0_2, %c0_3, %c0_4] : memref<1x32x8xbf16, #tpu.memory_space<vmem>>, vector<1x32x8xbf16>
    %3 = vector.shape_cast %2 : vector<1x32x8xbf16> to vector<32x8xbf16>
    %cst = arith.constant dense<0.000000e+00> : vector<8x8xf32>
    %4 = tpu.matmul %1, %3, %cst {dimension_numbers = #tpu.dot_dimension_numbers<[1], [0], [0], [1], [0, 0, 1, 1], [], []>} : vector<8x32xbf16>, vector<32x8xbf16>, vector<8x8xf32> -> vector<8x8xf32>
    %5 = arith.truncf %4 : vector<8x8xf32> to vector<8x8xbf16>
    %c0_5 = arith.constant 0 : index
    %c0_6 = arith.constant 0 : index
    %c0_7 = arith.constant 0 : index
    %c0_8 = arith.constant 0 : index
    %6 = vector.load %arg7[%c0_5, %c0_6, %c0_7, %c0_8] : memref<1x1x8x8xbf16, #tpu.memory_space<vmem>>, vector<1x1x8x8xbf16>
    %7 = vector.shape_cast %6 : vector<1x1x8x8xbf16> to vector<8x8xbf16>
    %8 = vector.shape_cast %5 : vector<8x8xbf16> to vector<1x1x8x8xbf16>
    tpu.vector_store %arg7[%c0_5, %c0_6, %c0_7, %c0_8], %8 {strides = array<i32>} : memref<1x1x8x8xbf16, #tpu.memory_space<vmem>>, vector<1x1x8x8xbf16>,
    %c0_9 = arith.constant 0 : index
    %c0_10 = arith.constant 0 : index
    %c0_11 = arith.constant 0 : index
    %9 = vector.load %arg5[%c0_9, %c0_10, %c0_11] : memref<1x32x8xbf16, #tpu.memory_space<vmem>>, vector<1x32x8xbf16>
    %10 = vector.shape_cast %9 : vector<1x32x8xbf16> to vector<32x8xbf16>
    %cst_12 = arith.constant dense<0.000000e+00> : vector<8x8xf32>
    %11 = tpu.matmul %1, %10, %cst_12 {dimension_numbers = #tpu.dot_dimension_numbers<[1], [0], [0], [1], [0, 0, 1, 1], [], []>} : vector<8x32xbf16>, vector<32x8xbf16>, vector<8x8xf32> -> vector<8x8xf32>
    %12 = arith.truncf %11 : vector<8x8xf32> to vector<8x8xbf16>
    %c0_13 = arith.constant 0 : index
    %c0_14 = arith.constant 0 : index
    %c0_15 = arith.constant 0 : index
    %c0_16 = arith.constant 0 : index
    %13 = vector.load %arg8[%c0_13, %c0_14, %c0_15, %c0_16] : memref<1x1x8x8xbf16, #tpu.memory_space<vmem>>, vector<1x1x8x8xbf16>
    %14 = vector.shape_cast %13 : vector<1x1x8x8xbf16> to vector<8x8xbf16>
    %15 = vector.shape_cast %12 : vector<8x8xbf16> to vector<1x1x8x8xbf16>
    tpu.vector_store %arg8[%c0_13, %c0_14, %c0_15, %c0_16], %15 {strides = array<i32>} : memref<1x1x8x8xbf16, #tpu.memory_space<vmem>>, vector<1x1x8x8xbf16>,
    %c0_17 = arith.constant 0 : index
    %c0_18 = arith.constant 0 : index
    %c0_19 = arith.constant 0 : index
    %16 = vector.load %arg6[%c0_17, %c0_18, %c0_19] : memref<1x32x8xbf16, #tpu.memory_space<vmem>>, vector<1x32x8xbf16>
    %17 = vector.shape_cast %16 : vector<1x32x8xbf16> to vector<32x8xbf16>
    %cst_20 = arith.constant dense<0.000000e+00> : vector<8x8xf32>
    %18 = tpu.matmul %1, %17, %cst_20 {dimension_numbers = #tpu.dot_dimension_numbers<[1], [0], [0], [1], [0, 0, 1, 1], [], []>} : vector<8x32xbf16>, vector<32x8xbf16>, vector<8x8xf32> -> vector<8x8xf32>
    %19 = arith.truncf %18 : vector<8x8xf32> to vector<8x8xbf16>
    %c0_21 = arith.constant 0 : index
    %c0_22 = arith.constant 0 : index
    %c0_23 = arith.constant 0 : index
    %c0_24 = arith.constant 0 : index
    %20 = vector.load %arg9[%c0_21, %c0_22, %c0_23, %c0_24] : memref<1x1x8x8xbf16, #tpu.memory_space<vmem>>, vector<1x1x8x8xbf16>
    %21 = vector.shape_cast %20 : vector<1x1x8x8xbf16> to vector<8x8xbf16>
    %22 = vector.shape_cast %19 : vector<8x8xbf16> to vector<1x1x8x8xbf16>
    tpu.vector_store %arg9[%c0_21, %c0_22, %c0_23, %c0_24], %22 {strides = array<i32>} : memref<1x1x8x8xbf16, #tpu.memory_space<vmem>>, vector<1x1x8x8xbf16>,
    return
  }
  func.func @transform_0(%arg0: i32, %arg1: i32, %arg2: i32) -> (i32, i32, i32) {
    %c0_i32 = arith.constant 0 : i32
    %c0_i32_0 = arith.constant 0 : i32
    return %arg0, %arg1, %c0_i32 : i32, i32, i32
  }
  func.func @transform_1(%arg0: i32, %arg1: i32, %arg2: i32) -> (i32, i32, i32) {
    %c0_i32 = arith.constant 0 : i32
    %c0_i32_0 = arith.constant 0 : i32
    %c0_i32_1 = arith.constant 0 : i32
    return %arg2, %c0_i32, %c0_i32_0 : i32, i32, i32
  }
  func.func @transform_2(%arg0: i32, %arg1: i32, %arg2: i32) -> (i32, i32, i32) {
    %c0_i32 = arith.constant 0 : i32
    %c0_i32_0 = arith.constant 0 : i32
    %c0_i32_1 = arith.constant 0 : i32
    return %arg2, %c0_i32, %c0_i32_0 : i32, i32, i32
  }
  func.func @transform_3(%arg0: i32, %arg1: i32, %arg2: i32) -> (i32, i32, i32) {
    %c0_i32 = arith.constant 0 : i32
    %c0_i32_0 = arith.constant 0 : i32
    %c0_i32_1 = arith.constant 0 : i32
    return %arg2, %c0_i32, %c0_i32_0 : i32, i32, i32
  }
  func.func @transform_4(%arg0: i32, %arg1: i32, %arg2: i32) -> (i32, i32, i32, i32) {
    %c0_i32 = arith.constant 0 : i32
    %c0_i32_0 = arith.constant 0 : i32
    return %arg0, %arg2, %arg1, %c0_i32 : i32, i32, i32, i32
  }
  func.func @transform_5(%arg0: i32, %arg1: i32, %arg2: i32) -> (i32, i32, i32, i32) {
    %c0_i32 = arith.constant 0 : i32
    %c0_i32_0 = arith.constant 0 : i32
    return %arg0, %arg2, %arg1, %c0_i32 : i32, i32, i32, i32
  }
  func.func @transform_6(%arg0: i32, %arg1: i32, %arg2: i32) -> (i32, i32, i32, i32) {
    %c0_i32 = arith.constant 0 : i32
    %c0_i32_0 = arith.constant 0 : i32
    return %arg0, %arg2, %arg1, %c0_i32 : i32, i32, i32, i32
  }
}

</mosaic_0001>

<bundles_post_ra>
// kernel: tpu_custom_call.1
= control target key start
LH: loop header
LB: loop body
LE: loop exit
PB: predicated region body
PF: predicated region fallthrough
CT: control target
= control target key end

     0   :  { %s1363_s0 = inlined_call_operand.vmem [shape: bf16[2,8,32], index: 0, kind: input, shape index: {}]   ;;  %s1364_s1 = inlined_call_operand.vmem [shape: bf16[4,32,8], index: 1, kind: input, shape index: {}]   ;;  %s1365_s2 = inlined_call_operand.vmem [shape: bf16[4,32,8], index: 2, kind: input, shape index: {}]   ;;  %s1366_s3 = inlined_call_operand.vmem [shape: bf16[4,32,8], index: 3, kind: input, shape index: {}]   ;;  %s1367_s4 = inlined_call_operand.hbm [shape: bf16[2,4,8,8], index: 4, kind: output, shape index: {0}]   ;;  %s1368_s5 = inlined_call_operand.hbm [shape: bf16[2,4,8,8], index: 5, kind: output, shape index: {1}]   ;;  %s1369_s6 = inlined_call_operand.hbm [shape: bf16[2,4,8,8], index: 6, kind: output, shape index: {2}]  }
   0x1   :  { %1375 = sst [smem:[#allocation12_spill]] %s1363_s0 }
   0x2   :  { %12 = vsyncpa [#allocation3], 0 }
   0x3   :  { %14 = vsyncpa [#allocation3 + $0x1], 0 }
   0x4   :  { %15 = vsyncpa [#allocation5], 0 }
   0x5   :  { %17 = vsyncpa [#allocation5 + $0x1], 0  ;;  %s1139_s21 = smov 0   ;;  %s1141_s22 = smov 0  }
   0x6   :  { %s1143_s23 = smov 0   ;;  %s1145_s24 = smov 0  }
   0x7   :  { %s1147_s25 = smov 0   ;;  %s1149_s26 = smov 0  }
   0x8   :  { %s1151_s27 = smov 0   ;;  %s1153_s28 = smov 0  }
   0x9 LB: > { %1376 = sst [smem:[#allocation9_spill]] %s1093_s27  ;;  %s1371_s29 = sadd.s32 4294967295, %s1097_s28   ;;  %s1097_s28 = sphi %s1153_s28, %s23_s28   ;;  %s1093_s27 = sphi %s1151_s27, %s1386_s27   ;;  %s1089_s26 = sphi %s1149_s26, %s1391_s26   ;;  %s1085_s25 = sphi %s1147_s25, %s1384_s25   ;;  %s1081_s24 = sphi %s1145_s24, %s1390_s24   ;;  %s1077_s23 = sphi %s1143_s23, %s1389_s23   ;;  %s1073_s22 = sphi %s1141_s22, %s1388_s22   ;;  %s1069_s21 = sphi %s1139_s21, %s1387_s21  }
   0xa   : > { %s1370_s30 = sadd.s32 4294967294, %s1097_s28   ;;  %s35_s7 = sadd.s32 1, %s1089_s26 }
   0xb   : > { %p36_p0 = scmp.ge.s32.totalorder %s35_s7, 4  ;;  %s42_s8 = sadd.s32 1, %s1093_s27 }
   0xc   : > { %p169_p1 = scmp.ne.s32.totalorder %s1077_s23, %s1073_s22  ;;  %p170_p2 = scmp.eq.s32.totalorder %s1371_s29, 7 }
   0xd   : > { %s1393_s7 = smov (%p36_p0, %s35_s7), 0  ;;  %s1395_s8 = smov (!%p36_p0, %s42_s8), %s1093_s27 }
   0xe   : > { %1377 = sst [smem:[#allocation10_spill]] %s1393_s7  ;;  %s153_s9 = ssub.s32 %s1089_s26, %s1393_s7 }
   0xf   : > { %p1192_p3 = por %p170_p2, %p169_p1  ;;  %p44_p4 = scmp.ge.s32.totalorder %s1395_s8, 2 }
  0x10   : > { %p175_p5 = scmp.ne.s32.totalorder %s1073_s22, %s1069_s21  ;;  %p176_p6 = scmp.eq.s32.totalorder %s1370_s30, 7 }
  0x11   : > { %p793_p7 = scmp.ge.s32.totalorder %s1097_s28, 1  ;;  %s1397_s8 = smov (%p44_p4, %s1395_s8), 0 }
  0x12   : > { %1379 = sst [smem:[#allocation11_spill]] %s1397_s8  ;;  %p1203_p8 = por %p176_p6, %p175_p5 }
  0x13   : > { %p288_p9 = scmp.lt.s32.totalorder %s1097_s28, 9  ;;  %s152_s12 = ssub.s32 %s1093_s27, %s1397_s8 }
  0x14   : > { %s159_s13 = sadd.s32 1, %s1077_s23  ;;  %s154_s14 = sor.u32 %s153_s9, %s152_s12 }
  0x15   : > { %p289_p10 = pnand %p793_p7, %p288_p9  ;;  %p157_p11 = scmp.eq.s32.totalorder %s154_s14, 0 }
  0x16   : > { %p352_p12 = scmp.lt.s32.totalorder (!%p289_p10), %s1081_s24, 3  ;;  %p345_p13 = scmp.lt.s32.totalorder (!%p289_p10), %s1085_s25, 1 }
  0x17   : > { %s1212_s15 = scalar_select %p157_p11, %s1077_s23, %s159_s13  }
  0x18   : > { %292 = sbr.rel (%p289_p10) target bundleno = 295 (0x127), region = 36  ;;  %s1381_s0 = sld [smem:[#allocation12_spill]] (!%p289_p10) }
  0x19   : > { %s328_s27 = sand.u32 (!%p289_p10), 1, %s1073_s22   ;;  %s816_s29 = sshll.u32 (!%p289_p10), %s1085_s25, 2 }
  0x1a   : > { %s571_s8 = sadd.s32 (!%p289_p10), %s1081_s24, %s816_s29 }
  0x1b   : > { %s1242_s20 = sshll.u32 (!%p289_p10), %s571_s8, 6  ;;  %s549_s8 = scalar_lea.sflag (!%p289_p10), [#allocation3], %s328_s27 }
  0x1c   : > { %s1258_s29 = scalar_lea.hbm (!%p289_p10), %s1368_s5, %s1242_s20 }
  0x1d   : > { %v1099_v0 = vmov 0.0   ;;  %s353_s16 = scalar_select %p352_p12, %s1081_s24, 3  ;;  %vm1100_vm0 = vmmov 0   ;;  %vm385_vm1 = vcmask 261120   ;;  %vm430_vm2 = vcmask 60416  }
  0x1e   : > { %836 = vmatprep.subr.bf16.mxu0 %v1099_v0  ;;  %844 = vmatprep.subr.bf16.mxu1 %v1099_v0  ;;  %s346_s17 = scalar_select %p345_p13, %s1085_s25, 1 }
  0x1f   : > { %840 = vmatprep.mubr.msk.bf16.mxu0 %vm1100_vm0, %v1099_v0  ;;  %848 = vmatprep.mubr.msk.bf16.mxu1 %vm1100_vm0, %v1099_v0  ;;  %s824_s18 = sshll.u32 %s353_s16, 4  ;;  %s1250_s24 = scalar_lea.hbm %s1367_s4, %s1242_s20 }
  0x20   : > { %s356_s9 = scalar_lea.vmem %s1364_s1, %s824_s18  ;;  %s361_s14 = scalar_lea.vmem %s1365_s2, %s824_s18 }
  0x21   : > { %v943_v1 = vld [vmem:[%s356_s9 + $0x8] sm:$0xff]   ;;  %s797_s30 = sshll.u32 %s346_s17, 2  ;;  %v945_v3 = vld [vmem:[%s356_s9] sm:$0xff]   ;;  %s366_s7 = scalar_lea.vmem %s1366_s3, %s824_s18 }
  0x22   : > { %v944_v2 = vld [vmem:[%s361_s14 + $0x8] sm:$0xff]   ;;  %837 = vmatpush3.bf16.msra.mxu0 %v943_v1  ;;  %s351_s19 = scalar_lea.vmem %s1381_s0, %s797_s30  ;;  %v946_v4 = vld [vmem:[%s361_s14] sm:$0xff]   ;;  %s1235_s30 = sshll.u32 %s328_s27, 2 }
  0x23   : > { %838 = vmatprep.subr.bf16.mxu0 %v1099_v0  ;;  %845 = vmatpush3.bf16.msra.mxu1 %v944_v2  ;;  %v368_v5 = vld [vmem:[%s351_s19] sm:$0xf]  ;;  %v947_v6 = vld [vmem:[%s366_s7 + $0x8] sm:$0xff]   ;;  %s1382_s17 = sadd.s32 4294967295, %s1097_s28   ;;  %s337_s12 = scalar_lea.vmem [#allocation4], %s1235_s30 }
  0x24   : > { %846 = vmatprep.subr.bf16.mxu1 %v1099_v0  ;;  %v948_v7 = vld [vmem:[%s366_s7] sm:$0xff]   ;;  %s1240_s18 = sand.u32 1, %s1382_s17   ;;  %s330_s7 = scalar_lea.vmem [#allocation2], %s1235_s30 }
  0x25   : > { %s575_s9 = sshll.u32 %s330_s7, 4  ;;  %s591_s13 = sshll.u32 %s337_s12, 4  ;;  %s1252_s9 = int_to_ptr.vmem [resolvable:$true] %s575_s9  ;;  %s1260_s13 = int_to_ptr.vmem [resolvable:$true] %s591_s13 }
  0x26   : > { %839 = vmatpush3.bf16.msra.mxu0 %v945_v3  ;;  %s949_s17 = scalar_lea.vmem %s1252_s9, 64  ;;  %s1101_s25 = smov [#allocation2]  }
  0x27   : > { %847 = vmatpush3.bf16.msra.mxu1 %v946_v4  ;;  %852 = vmatprep.subr.bf16.mxu0 %v1099_v0  ;;  %p950_p0 = scmp.ne.s32.totalorder %s1252_s9, %s949_s17  ;;  %s953_s14 = sshll.u32 %s1101_s25, 4  ;;  %s954_s14 = int_to_ptr.vmem [resolvable:$false] %s953_s14 }
  0x28   : > { %s955_s16 = scalar_lea.vmem %s954_s14, 128  ;;  %p956_p4 = scmp.lt.s32.totalorder %s1252_s9, %s954_s14 }
  0x29   : > { %841 = vmatmul.mubr.msk.bf16.vlgmr.msra.gmra.mxu0 %vm385_vm1, %v368_v5  ;;  %p951_p1 = pnand %p950_p0, %p1192_p3  ;;  %p957_p5 = scmp.lt.s32.totalorder %s955_s16, %s949_s17 }
  0x2a   : > { %853 = vmatpush3.bf16.msra.mxu0 %v947_v6  ;;  %849 = vmatmul.mubr.msk.bf16.vlgmr.msra.gmra.mxu1 %vm385_vm1, %v368_v5 }
  0x2b   : > { %854 = vmatprep.subr.bf16.mxu0 %v1099_v0  ;;  %856 = vmatprep.mubr.msk.bf16.mxu0 %vm1100_vm0, %v1099_v0  ;;  %p952_p2 = pneg %p951_p1  ;;  %p958_p6 = por %p957_p5, %p956_p4 }
  0x2d   : > { %p959_p7 = pnand %p958_p6, %p952_p2 }
  0x2e   : > { %855 = vmatpush3.bf16.msra.mxu0 %v948_v7 }
  0x31   : > { %857 = vmatmul.mubr.msk.bf16.vlgmr.msra.gmra.mxu0 %vm385_vm1, %v368_v5 }
  0xe9   : > { %v423_v8 = vpop.f32.mrf.mxu0 }
  0xea   : > { %v429_v9 = vpack.c.bf16 %v423_v8, %v423_v8  ;;  %v482_v10 = vpop.f32.mrf.mxu1 }
  0xeb   : > { %v842_v11 = vpop.f32.mrf.mxu0  ;;  %v488_v12 = vpack.c.bf16 %v482_v10, %v482_v10 }
  0xec   : > { %v850_v13 = vpop.f32.mrf.mxu1  ;;  %431 = vst.msk [vmem:[%s330_s7] sm:$0xf] %vm430_vm2, %v429_v9 }
  0xed   : > { %v426_v14 = vpop.f32.mrf.mxu0  ;;  %489 = vst.msk [vmem:[%s337_s12] sm:$0xf] %vm430_vm2, %v488_v12 }
  0xee   : > { %962 = shalt.err (!%p959_p7)
}
  0xef   : > { %s963_s7 = scalar_lea.hbm %s1250_s24, 64  ;;  %s967_s19 = scalar_lea.hbm %s1367_s4, 512 }
  0xf0   : > { %p964_p9 = scmp.ne.s32.totalorder %s1250_s24, %s963_s7  ;;  %p968_p12 = scmp.lt.s32.totalorder %s1250_s24, %s1367_s4 }
  0xf1   : > { %p969_p13 = scmp.lt.s32.totalorder %s967_s19, %s963_s7 }
  0xf2   : > { %p965_p10 = pnand %p964_p9, %p1192_p3 }
  0xf3   : > { %p970_p0 = por %p969_p13, %p968_p12 }
  0xf4   : > { %p966_p11 = pneg %p965_p10 }
  0xf6   : > { %p971_p1 = pnand %p970_p0, %p966_p11 }
  0xf8   : > { %974 = shalt.err (!%p971_p1)
}
  0xf9   : > { %860 = dma.vmem_to_hbm [thread:$0]  (%p1192_p3), %s1252_s9, 64, %s1250_s24, %s549_s8   ;;  %v485_v15 = vpop.f32.mrf.mxu1 }
  0xfa   : > { %s554_s17 = scalar_lea.sflag [#allocation5], %s1240_s18  ;;  %s975_s14 = scalar_lea.vmem %s1260_s13, 64 }
  0xfb   : > { %p976_p2 = scmp.ne.s32.totalorder %s1260_s13, %s975_s14  ;;  %s1102_s0 = smov [#allocation4]  }
  0xfc   : > { %s979_s16 = sshll.u32 %s1102_s0, 4  ;;  %s980_s16 = int_to_ptr.vmem [resolvable:$false] %s979_s16 }
  0xfd   : > { %p977_p4 = pnand %p976_p2, %p1192_p3  ;;  %s981_s7 = scalar_lea.vmem %s980_s16, 128 }
  0xfe   : > { %p982_p6 = scmp.lt.s32.totalorder %s1260_s13, %s980_s16  ;;  %p983_p7 = scmp.lt.s32.totalorder %s981_s7, %s975_s14 }
  0xff   : > { %p978_p5 = pneg %p977_p4 }
 0x100   : > { %p984_p9 = por %p983_p7, %p982_p6 }
 0x102   : > { %p985_p10 = pnand %p984_p9, %p978_p5 }
 0x104   : > { %988 = shalt.err (!%p985_p10)
}
 0x105   : > { %s989_s9 = scalar_lea.hbm %s1258_s29, 64  ;;  %s993_s27 = scalar_lea.hbm %s1368_s5, 512 }
 0x106   : > { %p990_p11 = scmp.ne.s32.totalorder %s1258_s29, %s989_s9  ;;  %p994_p0 = scmp.lt.s32.totalorder %s1258_s29, %s1368_s5 }
 0x107   : > { %p995_p1 = scmp.lt.s32.totalorder %s993_s27, %s989_s9 }
 0x108   : > { %p991_p12 = pnand %p990_p11, %p1192_p3 }
 0x109   : > { %p996_p2 = por %p995_p1, %p994_p0 }
 0x10a   : > { %p992_p13 = pneg %p991_p12 }
 0x10c   : > { %p997_p4 = pnand %p996_p2, %p992_p13 }
 0x10e   : > { %1000 = shalt.err (!%p997_p4)
}
 0x10f   : > { %861 = dma.vmem_to_hbm [thread:$0]  (%p1192_p3), %s1260_s13, 64, %s1258_s29, %s554_s17   ;;  %v843_v16 = vpop.f32.mrf.mxu0  ;;  %v851_v17 = vpop.f32.mrf.mxu1 }
 0x110   : > { %s344_s25 = scalar_lea.vmem [#allocation6], %s1235_s30  ;;  %s1312_s7 = scalar_lea.hbm %s1369_s6, %s1242_s20 }
 0x111   : > { %s607_s14 = sshll.u32 %s344_s25, 4  ;;  %v540_v18 = vpop.f32.mrf.mxu0  ;;  %s1103_s30 = smov [#allocation6]   ;;  %s608_s14 = int_to_ptr.vmem [resolvable:$true] %s607_s14 }
 0x112   : > { %v546_v19 = vpack.c.bf16 %v540_v18, %v540_v18  ;;  %s1001_s9 = scalar_lea.vmem %s608_s14, 64  ;;  %s1005_s13 = sshll.u32 %s1103_s30, 4  ;;  %s1006_s13 = int_to_ptr.vmem [resolvable:$false] %s1005_s13 }
 0x113   : > { %v858_v20 = vpop.f32.mrf.mxu0  ;;  %p1002_p5 = scmp.ne.s32.totalorder %s608_s14, %s1001_s9  ;;  %s1007_s29 = scalar_lea.vmem %s1006_s13, 128 }
 0x114   : > { %547 = vst.msk [vmem:[%s344_s25] sm:$0xf] %vm430_vm2, %v546_v19  ;;  %p1008_p9 = scmp.lt.s32.totalorder %s608_s14, %s1006_s13  ;;  %p1009_p10 = scmp.lt.s32.totalorder %s1007_s29, %s1001_s9 }
 0x115   : > { %v543_v21 = vpop.f32.mrf.mxu0  ;;  %p1003_p6 = pnand %p1002_p5, %p1192_p3 }
 0x116   : > { %p1010_p11 = por %p1009_p10, %p1008_p9 }
 0x117   : > { %p1004_p7 = pneg %p1003_p6 }
 0x119   : > { %p1011_p12 = pnand %p1010_p11, %p1004_p7 }
 0x11b   : > { %1014 = shalt.err (!%p1011_p12)
}
 0x11c   : > { %s1015_s20 = scalar_lea.hbm %s1312_s7, 64  ;;  %s1019_s27 = scalar_lea.hbm %s1369_s6, 512 }
 0x11d   : > { %p1016_p13 = scmp.ne.s32.totalorder %s1312_s7, %s1015_s20  ;;  %p1020_p2 = scmp.lt.s32.totalorder %s1312_s7, %s1369_s6 }
 0x11e   : > { %p1021_p4 = scmp.lt.s32.totalorder %s1019_s27, %s1015_s20 }
 0x11f   : > { %p1017_p0 = pnand %p1016_p13, %p1192_p3 }
 0x120   : > { %p1022_p5 = por %p1021_p4, %p1020_p2 }
 0x121   : > { %p1018_p1 = pneg %p1017_p0 }
 0x123   : > { %p1023_p6 = pnand %p1022_p5, %p1018_p1 }
 0x125   : > { %1026 = shalt.err (!%p1023_p6)
}
 0x126   : > { %862 = dma.vmem_to_hbm [thread:$0]  (%p1192_p3), %s608_s14, 64, %s1312_s7, %s554_s17   ;;  %v859_v22 = vpop.f32.mrf.mxu0 }
 0x127 PF: > { %p876_p7 = scmp.ge.s32.totalorder %s1097_s28, 2  ;;  %s619_s25 = sand.u32 1, %s1069_s21  }
 0x128   : > { %s620_s0 = scalar_lea.sflag [#allocation3], %s619_s25 }
 0x129   : > { %p867_p9 = pnand %p876_p7, %p1203_p8 }
 0x12b   : > { %p868_p10 = pneg %p867_p9 }
 0x12d   : > { %1060 = dma.done.wait (%p868_p10), %s620_s0, 64  }
 0x12e   : > { %1062 = vsyncadd (%p868_p10), %s620_s0, 4294967232  ;;  %s1383_s16 = sadd.s32 4294967294, %s1097_s28  }
 0x12f   : > { %s628_s10 = sand.u32 1, %s1383_s16  }
 0x130   : > { %s629_s9 = scalar_lea.sflag [#allocation5], %s628_s10 }
 0x131   : > { %1064 = dma.done.wait (%p868_p10), %s629_s9, 128  }
 0x132   : > { %1066 = vsyncadd (%p868_p10), %s629_s9, 4294967168  ;;  %s23_s28 = sadd.s32 1, %s1097_s28   ;;  %s1384_s25 = sld [smem:[#allocation9_spill]] }
 0x133   : > { %p20_p3 = scmp.ge.s32.totalorder %s23_s28, 10   ;;  %s1385_s11 = sld [smem:[#allocation10_spill]] }
 0x134   : > { %s1386_s27 = sld [smem:[#allocation11_spill]]  ;;  %s1387_s21 = smov %s1073_s22 }
 0x135   : > { %s1388_s22 = smov %s1077_s23  ;;  %s1389_s23 = smov %s1212_s15 }
 0x136   : > { %s1390_s24 = smov %s1089_s26  ;;  %22 = sbr.rel (!%p20_p3) target bundleno = 9 (0x9), region = 112 }
 0x139   : > { %s1391_s26 = smov %s1385_s11 }
 0x13b   :  { %643 = vsyncpa [#allocation3], 1 }
 0x13c   :  { %645 = vsyncpa [#allocation3 + $0x1], 1 }
 0x13d   :  { %646 = vsyncpa [#allocation5], 1 }
 0x13e   :  { %648 = vsyncpa [#allocation5 + $0x1], 1 }

</bundles_post_ra>
